<compile_context>
chip_gen: v7x
topology: tpu7x:2x2x1
jax: 0.10.0
libtpu: 0.0.40
codegen_flags: <defaults>
</compile_context>

<pallas_src>
import jax
import jax.numpy as jnp
from jax.experimental import pallas as pl
from jax.experimental.pallas import tpu as pltpu

LANE = 128


def _ceil_to(a, b):
    return -(-a // b) * b


# ---------------------------------------------------------------------------
# Kernel 1: y^T = [Wc ; Ws] @ patches^T  (one MXU matmul emits conv & shortcut)
#           plus per-tile BN partial sums of the conv half (lane reductions).
# ---------------------------------------------------------------------------
def conv_stats_kernel(p_ref, w_ref, y_ref, stats_ref):
    co = y_ref.shape[0] // 2                                # real Cout
    # (2*Cout, K) @ (K, tm) -> (2*Cout, tm), f32 accumulate on the MXU.
    y = jnp.dot(w_ref[...], p_ref[...], preferred_element_type=jnp.float32)
    yb = y.astype(y_ref.dtype)
    y_ref[...] = yb                                         # lane-dense bf16 store

    # BN partial stats over the *stored* (bf16-rounded) conv rows, so kernel 2
    # normalizes exactly the distribution these statistics describe.
    conv = yb[:co, :].astype(jnp.float32)                   # (Cout, tm)
    s1 = jnp.sum(conv, axis=1, keepdims=True)               # (Cout, 1) XLU lane-reduce
    s2 = jnp.sum(conv * conv, axis=1, keepdims=True)
    s = jnp.concatenate([s1, s2], axis=1)                   # (Cout, 2) — no dead rows
    cs = stats_ref.shape[0]
    if cs > co:                                             # static; only if Cout % 8 != 0
        s = jnp.pad(s, ((0, cs - co), (0, 0)))
    stats_ref[...] = s


# ---------------------------------------------------------------------------
# Kernel 2: fused BatchNorm affine + ReLU + shortcut add (pure VPU).
# ---------------------------------------------------------------------------
def bn_relu_add_kernel(y_ref, scale_ref, shift_ref, out_ref):
    co = out_ref.shape[0]
    y = y_ref[...].astype(jnp.float32)                      # (2*Cout, tm)
    bn = y[:co, :] * scale_ref[...] + shift_ref[...]        # (Cout,1) lane-broadcast
    out_ref[...] = (jnp.maximum(bn, 0.0) + y[co:, :]).astype(out_ref.dtype)


# ---------------------------------------------------------------------------
# Wrapper: im2col glue (transposed, bf16), weight packing, tiny BN math.
# ---------------------------------------------------------------------------
def efficient_res_block_3d(x, conv_w, sc_w, gamma, beta, stride, eps=1e-5,
                           tm_max=4096):
    N, Cin, D, H, W = x.shape
    Cout = conv_w.shape[0]
    sd, sh, sw = stride
    Do = (D + 2 - 3) // sd + 1
    Ho = (H + 2 - 3) // sh + 1
    Wo = (W + 2 - 3) // sw + 1
    M = N * Do * Ho * Wo
    K = Cin * 27

    # Tile on the lane (M) axis: big for HBM roofline, but leave >=16 grid steps
    # when M allows (2 TensorCores on v7x, >=8 pipelined steps each).
    tm = min(tm_max, max(256, _ceil_to(pl.cdiv(M, 16), LANE)), _ceil_to(M, LANE))
    Mp = _ceil_to(M, tm)
    n_tiles = Mp // tm
    Cs = _ceil_to(Cout, 8)                                  # stats sublane rows

    # ---- im2col, transposed to (K, M), bf16 (XLA glue; see TODO above) ----
    xb = x.astype(jnp.bfloat16)
    xp = jnp.pad(xb, ((0, 0), (0, 0), (1, 1), (1, 1), (1, 1)))
    cols = []
    for kd in range(3):
        for kh in range(3):
            for kw in range(3):
                cols.append(
                    xp[:, :,
                       kd:kd + sd * (Do - 1) + 1:sd,
                       kh:kh + sh * (Ho - 1) + 1:sh,
                       kw:kw + sw * (Wo - 1) + 1:sw])
    patches = jnp.stack(cols, axis=2)                       # (N, Cin, 27, Do, Ho, Wo)
    patches = patches.transpose(1, 2, 0, 3, 4, 5).reshape(K, M)
    if Mp > M:
        # zero columns contribute 0 to both BN sums -> stats stay exact
        patches = jnp.pad(patches, ((0, 0), (0, Mp - M)))

    # ---- combined weight block [conv ; shortcut], (2*Cout, K), no padding ----
    # shortcut 1x1 weight scattered into the center-tap rows (tap 13 = (1,1,1)).
    wc = conv_w.reshape(Cout, K).astype(jnp.float32)
    ws = jnp.zeros((Cout, Cin, 27), jnp.float32)
    ws = ws.at[:, :, 13].set(sc_w.reshape(Cout, Cin).astype(jnp.float32))
    w_comb = jnp.concatenate([wc, ws.reshape(Cout, K)], axis=0).astype(jnp.bfloat16)

    y, stats = pl.pallas_call(
        conv_stats_kernel,
        out_shape=(jax.ShapeDtypeStruct((2 * Cout, Mp), jnp.bfloat16),
                   jax.ShapeDtypeStruct((n_tiles * Cs, 2), jnp.float32)),
        grid=(n_tiles,),
        in_specs=[pl.BlockSpec((K, tm), lambda i: (0, i)),
                  pl.BlockSpec((2 * Cout, K), lambda i: (0, 0))],
        out_specs=(pl.BlockSpec((2 * Cout, tm), lambda i: (0, i)),
                   pl.BlockSpec((Cs, 2), lambda i: (i, 0))),
        compiler_params=pltpu.CompilerParams(
            dimension_semantics=("parallel",)),             # per-tile partial sums
    )(patches, w_comb)

    # ---- tiny per-channel BN parameter math (f32, XLA glue) ----
    st = stats.reshape(n_tiles, Cs, 2)
    s1 = jnp.sum(st[:, :Cout, 0], axis=0)
    s2 = jnp.sum(st[:, :Cout, 1], axis=0)
    mean = s1 / M                                           # divide by TRUE M
    var = jnp.maximum(s2 / M - mean * mean, 0.0)            # biased var (training BN)
    scale = gamma.astype(jnp.float32) / jnp.sqrt(var + eps)
    shift = beta.astype(jnp.float32) - mean * scale
    scale = scale.reshape(Cout, 1)
    shift = shift.reshape(Cout, 1)

    out_t = pl.pallas_call(
        bn_relu_add_kernel,
        out_shape=jax.ShapeDtypeStruct((Cout, Mp), jnp.float32),
        grid=(n_tiles,),
        in_specs=[pl.BlockSpec((2 * Cout, tm), lambda i: (0, i)),
                  pl.BlockSpec((Cout, 1), lambda i: (0, 0)),
                  pl.BlockSpec((Cout, 1), lambda i: (0, 0))],
        out_specs=pl.BlockSpec((Cout, tm), lambda i: (0, i)),
        compiler_params=pltpu.CompilerParams(
            dimension_semantics=("parallel",)),
    )(y, scale, shift)

    # back to the PyTorch NCDHW layout (small: Cout real rows only, no 128-pad slice)
    out = out_t[:, :M].reshape(Cout, N, Do, Ho, Wo).transpose(1, 0, 2, 3, 4)
    return out


# ---------------------------------------------------------------------------
# Pure-JAX f32 reference (correctness check only).
# ---------------------------------------------------------------------------
def reference(x, conv_w, sc_w, gamma, beta, stride, eps=1e-5):
    y = jax.lax.conv_general_dilated(
        x, conv_w, window_strides=stride, padding=((1, 1), (1, 1), (1, 1)),
        dimension_numbers=("NCDHW", "OIDHW", "NCDHW"))
    mean = y.mean(axis=(0, 2, 3, 4), keepdims=True)
    var = y.var(axis=(0, 2, 3, 4), keepdims=True)           # biased, matches BN
    yhat = (y - mean) / jnp.sqrt(var + eps)
    yhat = yhat * gamma[None, :, None, None, None] + beta[None, :, None, None, None]
    yhat = jnp.maximum(yhat, 0.0)
    sc = jax.lax.conv_general_dilated(
        x, sc_w, window_strides=stride, padding=((0, 0), (0, 0), (0, 0)),
        dimension_numbers=("NCDHW", "OIDHW", "NCDHW"))
    return yhat + sc


if __name__ == "__main__":
    key = jax.random.PRNGKey(0)
    N, Cin, Cout = 2, 4, 8
    D, H, W = 8, 16, 16
    stride = (1, 2, 2)        # EfficientResBlock3D(4, 8, stride=2, temporal_stride=1)

    k1, k2, k3 = jax.random.split(key, 3)
    x = jax.random.normal(k1, (N, Cin, D, H, W), jnp.float32)
    conv_w = jax.random.normal(k2, (Cout, Cin, 3, 3, 3), jnp.float32) * 0.1
    sc_w = jax.random.normal(k3, (Cout, Cin, 1, 1, 1), jnp.float32) * 0.1
    gamma = jnp.ones((Cout,), jnp.float32)                  # BatchNorm3d default init
    beta = jnp.zeros((Cout,), jnp.float32)

    out = efficient_res_block_3d(x, conv_w, sc_w, gamma, beta, stride)
    out = jax.block_until_ready(out)

    ref = reference(x, conv_w, sc_w, gamma, beta, stride)
    assert out.shape == ref.shape, (out.shape, ref.shape)
    # bf16 matmul inputs + bf16 intermediate -> tolerance ~5e-2 vs f32 reference
    assert jnp.allclose(out, ref, atol=5e-2, rtol=5e-2), \
        float(jnp.max(jnp.abs(out - ref)))

    print("KERNEL_OK")
</pallas_src>

<mosaic_0001>
module attributes {stable_mosaic.version = 11 : i64} {
  func.func @conv_stats_kernel(%arg0: i32, %arg1: memref<108x256xbf16, #tpu.memory_space<vmem>>, %arg2: memref<16x108xbf16, #tpu.memory_space<vmem>>, %arg3: memref<16x256xbf16, #tpu.memory_space<vmem>>, %arg4: memref<8x2xf32, #tpu.memory_space<vmem>>) attributes {dimension_semantics = [#tpu.dimension_semantics<parallel>], iteration_bounds = array<i64: 4>, scalar_prefetch = 0 : i64, scratch_operands = 0 : i64, tpu.core_type = #tpu.core_type<tc>, window_params = [{transform_indices = @transform_0, window_bounds = array<i64: 108, 256>}, {pipeline_mode = #tpu.pipeline_mode<synchronous>, transform_indices = @transform_1, window_bounds = array<i64: 16, 108>}, {transform_indices = @transform_2, window_bounds = array<i64: 16, 256>}, {transform_indices = @transform_3, window_bounds = array<i64: 8, 2>}]} {
    %c0 = arith.constant 0 : index
    %c0_0 = arith.constant 0 : index
    %0 = vector.load %arg2[%c0, %c0_0] : memref<16x108xbf16, #tpu.memory_space<vmem>>, vector<16x108xbf16>
    %c0_1 = arith.constant 0 : index
    %c0_2 = arith.constant 0 : index
    %1 = vector.load %arg1[%c0_1, %c0_2] : memref<108x256xbf16, #tpu.memory_space<vmem>>, vector<108x256xbf16>
    %cst = arith.constant dense<0.000000e+00> : vector<16x256xf32>
    %2 = tpu.matmul %0, %1, %cst {dimension_numbers = #tpu.dot_dimension_numbers<[1], [0], [0], [1], [0, 0, 1, 1], [], []>} : vector<16x108xbf16>, vector<108x256xbf16>, vector<16x256xf32> -> vector<16x256xf32>
    %3 = arith.truncf %2 : vector<16x256xf32> to vector<16x256xbf16>
    %c0_3 = arith.constant 0 : index
    %c0_4 = arith.constant 0 : index
    %4 = vector.load %arg3[%c0_3, %c0_4] : memref<16x256xbf16, #tpu.memory_space<vmem>>, vector<16x256xbf16>
    tpu.vector_store %arg3[%c0_3, %c0_4], %3 {strides = array<i32>} : memref<16x256xbf16, #tpu.memory_space<vmem>>, vector<16x256xbf16>,
    %5 = vector.extract_strided_slice %3 {offsets = [0, 0], sizes = [8, 256], strides = [1, 1]} : vector<16x256xbf16> to vector<8x256xbf16>
    %6 = arith.extf %5 : vector<8x256xbf16> to vector<8x256xf32>
    %cst_5 = arith.constant dense<0.000000e+00> : vector<8xf32>
    %7 = vector.multi_reduction <add>, %6, %cst_5 [1] : vector<8x256xf32> to vector<8xf32>
    %8 = vector.shape_cast %7 : vector<8xf32> to vector<8x1xf32>
    %9 = arith.mulf %6, %6 : vector<8x256xf32>
    %cst_6 = arith.constant dense<0.000000e+00> : vector<8xf32>
    %10 = vector.multi_reduction <add>, %9, %cst_6 [1] : vector<8x256xf32> to vector<8xf32>
    %11 = vector.shape_cast %10 : vector<8xf32> to vector<8x1xf32>
    %12 = tpu.concatenate %8, %11 in 1 : vector<8x1xf32>, vector<8x1xf32> -> vector<8x2xf32>
    %c0_7 = arith.constant 0 : index
    %c0_8 = arith.constant 0 : index
    %13 = vector.load %arg4[%c0_7, %c0_8] : memref<8x2xf32, #tpu.memory_space<vmem>>, vector<8x2xf32>
    tpu.vector_store %arg4[%c0_7, %c0_8], %12 {strides = array<i32>} : memref<8x2xf32, #tpu.memory_space<vmem>>, vector<8x2xf32>,
    return
  }
  func.func @transform_0(%arg0: i32) -> (i32, i32) {
    %c0_i32 = arith.constant 0 : i32
    %c0_i32_0 = arith.constant 0 : i32
    return %c0_i32, %arg0 : i32, i32
  }
  func.func @transform_1(%arg0: i32) -> (i32, i32) {
    %c0_i32 = arith.constant 0 : i32
    %c0_i32_0 = arith.constant 0 : i32
    %c0_i32_1 = arith.constant 0 : i32
    return %c0_i32, %c0_i32_0 : i32, i32
  }
  func.func @transform_2(%arg0: i32) -> (i32, i32) {
    %c0_i32 = arith.constant 0 : i32
    %c0_i32_0 = arith.constant 0 : i32
    return %c0_i32, %arg0 : i32, i32
  }
  func.func @transform_3(%arg0: i32) -> (i32, i32) {
    %c0_i32 = arith.constant 0 : i32
    %c0_i32_0 = arith.constant 0 : i32
    return %arg0, %c0_i32 : i32, i32
  }
}

</mosaic_0001>

<bundles_post_ra>
// kernel: tpu_custom_call.1
= control target key start
LH: loop header
LB: loop body
LE: loop exit
PB: predicated region body
PF: predicated region fallthrough
CT: control target
= control target key end

     0   :  { %9 = vsyncpa [#allocation3], 0  ;;  %s1027_s0 = inlined_call_operand.hbm [shape: bf16[108,1024], index: 0, kind: input, shape index: {}]   ;;  %s1028_s1 = inlined_call_operand.hbm [shape: bf16[16,108], index: 1, kind: input, shape index: {}]   ;;  %s1029_s2 = inlined_call_operand.hbm [shape: bf16[16,1024], index: 2, kind: output, shape index: {0}]   ;;  %s1030_s3 = inlined_call_operand.vmem [shape: f32[32,2], index: 3, kind: output, shape index: {1}]  }
   0x1   :  { %11 = vsyncpa [#allocation3 + $0x1], 0 }
   0x2   :  { %12 = vsyncpa [#allocation6], 0 }
   0x3   :  { %13 = vsyncpa [#allocation4], 0 }
   0x4   :  { %15 = vsyncpa [#allocation4 + $0x1], 0  ;;  %s807_s12 = smov 0   ;;  %s809_s13 = smov 0  }
   0x5   :  { %s811_s14 = smov 0   ;;  %s813_s15 = smov 0  }
   0x6 LB: > { %s828_s16 = sadd.s32 4294967295, %s773_s15   ;;  %s517_s17 = sadd.s32 4294967294, %s773_s15   ;;  %s773_s15 = sphi %s813_s15, %s1053_s15   ;;  %s769_s14 = sphi %s811_s14, %s1052_s14   ;;  %s765_s13 = sphi %s809_s13, %s1051_s13   ;;  %s761_s12 = sphi %s807_s12, %s1050_s12  }
   0x7   : > { %s832_s18 = sadd.s32 1, %s773_s15   ;;  %s28_s19 = sadd.s32 1, %s769_s14 }
   0x8   : > { %s25_s20 = ssub.s32 %s773_s15, %s832_s18  ;;  %p35_p0 = scmp.ne.s32.totalorder %s769_s14, %s765_s13 }
   0x9   : > { %p26_p1 = scmp.eq.s32.totalorder %s25_s20, 0  ;;  %p36_p2 = scmp.eq.s32.totalorder %s773_s15, 0 }
   0xa   : > { %p41_p3 = scmp.ne.s32.totalorder %s765_s13, %s761_s12  ;;  %p1031_p4 = scmp.eq.s32.totalorder %s828_s16, 0 }
   0xb   : > { %s844_s21 = scalar_select %p26_p1, %s769_s14, %s28_s19  }
   0xc   : > { %p846_p5 = por %p36_p2, %p35_p0  ;;  %p852_p6 = por %p1031_p4, %p41_p3 }
   0xd   : > { %p86_p7 = scmp.eq.s32.totalorder %s828_s16, 3  ;;  %p92_p8 = scmp.eq.s32.totalorder %s517_s17, 3 }
   0xe   : > { %s1035_s22 = scalar_select %p846_p5, 1, 0 }
   0xf   : > { %s1036_s23 = scalar_select %p852_p6, 1, 0 }
  0x10   : > { %p518_p9 = scmp.ge.s32.totalorder %s773_s15, 1  ;;  %p125_p10 = scmp.lt.s32.totalorder %s773_s15, 5 }
  0x11   : > { %p859_p11 = por %p86_p7, %p35_p0  ;;  %p863_p12 = por %p92_p8, %p41_p3 }
  0x12   : > { %p867_p13 = pnand %p518_p9, %p125_p10  ;;  %s775_s27 = smov [#allocation5]  }
  0x13   : > { %s1037_s24 = scalar_select %p859_p11, 1, 0 }
  0x14   : > { %s1038_s25 = scalar_select %p863_p12, 1, 0 }
  0x15   : > { %s1039_s26 = scalar_select %p867_p13, 1, 0 }
  0x16   : > { %p565_p1 = pneg %p867_p13  ;;  %s137_s28 = sshll.u32 %s775_s27, 4  ;;  %s138_s28 = int_to_ptr.vmem [resolvable:$true] %s137_s28 }
  0x17   : > { %s151_s30 = sand.u32 1, %s769_s14   ;;  %s645_s6 = scalar_lea.hbm %s1028_s1, 128 }
  0x18   : > { %p875_p2 = pnand %p565_p1, %p1031_p4  ;;  %p646_p3 = scmp.ne.s32.totalorder %s1028_s1, %s645_s6 }
  0x19   : > { %p652_p10 = scmp.lt.u32.totalorder %s645_s6, %s1028_s1 }
  0x1a   : > { %p647_p7 = pneg %p875_p2 }
  0x1c   : > { %p648_p8 = pnand %p647_p7, %p646_p3 }
  0x1e   : > { %p649_p9 = pneg %p648_p8 }
  0x20   : > { %p654_p1 = pnand %p652_p10, %p649_p9 }
  0x22   : > { %657 = shalt.err (!%p654_p1)
}
  0x23   : > { %s658_s11 = scalar_lea.vmem %s138_s28, 128  ;;  %p666_p11 = scmp.lt.s32.totalorder %s138_s28, %s138_s28 }
  0x24   : > { %p659_p4 = scmp.ne.s32.totalorder %s138_s28, %s658_s11  ;;  %p667_p6 = scmp.lt.s32.totalorder %s658_s11, %s658_s11 }
  0x26   : > { %p661_p0 = pnand %p659_p4, %p647_p7  ;;  %p668_p13 = por %p667_p6, %p666_p11 }
  0x28   : > { %p662_p12 = pneg %p661_p0 }
  0x2a   : > { %p669_p5 = pnand %p668_p13, %p662_p12 }
  0x2c   : > { %672 = shalt.err (!%p669_p5)
}
  0x2d   : > { %s776_s17 = smov 64   ;;  %s777_s19 = smov 4  }
  0x2e   : > { %568 = dma.hbm_to_vmem [thread:$0]  (!%p875_p2), %s1028_s1, 128, %s138_s28, [#allocation6], %s776_s17, %s776_s17, %s777_s19  }
  0x2f   : > { %p1041_p3 = scmp.ne.s32.totalorder %s1035_s22, 0  ;;  %p1042_p8 = scmp.lt.s32.totalorder %s773_s15, 4 }
  0x30   : > { %s555_s5 = smul.u32 112, %s151_s30  ;;  %s551_s6 = sshll.u32 %s773_s15, 7 }
  0x31   : > { %p901_p4 = pnand %p1042_p8, %p1041_p3  ;;  %s909_s9 = scalar_lea.hbm %s1027_s0, %s551_s6 }
  0x32   : > { %s155_s28 = scalar_lea.vmem [#allocation2], %s555_s5  ;;  %s913_s29 = scalar_lea.sflag [#allocation3], %s151_s30 }
  0x33   : > { %s162_s22 = sshll.u32 %s155_s28, 4  ;;  %s673_s10 = scalar_lea.hbm %s909_s9, 1792  ;;  %s911_s22 = int_to_ptr.vmem [resolvable:$true] %s162_s22 }
  0x34   : > { %p674_p5 = scmp.ne.s32.totalorder %s909_s9, %s673_s10  ;;  %p675_p6 = pneg %p901_p4 }
  0x35   : > { %s678_s19 = scalar_lea.hbm %s1027_s0, 7168  ;;  %p679_p13 = scmp.lt.u32.totalorder %s909_s9, %s1027_s0 }
  0x36   : > { %p676_p11 = pnand %p675_p6, %p674_p5  ;;  %p680_p2 = scmp.lt.u32.totalorder %s678_s19, %s673_s10 }
  0x37   : > { %p682_p7 = scmp.lt.u32.totalorder %s673_s10, %s909_s9 }
  0x38   : > { %p677_p12 = pneg %p676_p11  ;;  %p681_p0 = por %p680_p2, %p679_p13 }
  0x3a   : > { %p683_p9 = por %p682_p7, %p681_p0 }
  0x3c   : > { %p684_p10 = pnand %p683_p9, %p677_p12 }
  0x3e   : > { %687 = shalt.err (!%p684_p10)
}
  0x3f   : > { %s688_s30 = scalar_lea.vmem %s911_s22, 1792  ;;  %s778_s5 = smov [#allocation2]  }
  0x40   : > { %p689_p1 = scmp.ne.s32.totalorder %s911_s22, %s688_s30  ;;  %s693_s6 = sshll.u32 %s778_s5, 4  ;;  %s694_s6 = int_to_ptr.vmem [resolvable:$false] %s693_s6 }
  0x41   : > { %s695_s7 = scalar_lea.vmem %s694_s6, 3584  ;;  %p696_p5 = scmp.lt.s32.totalorder %s911_s22, %s694_s6 }
  0x42   : > { %p691_p3 = pnand %p689_p1, %p675_p6  ;;  %p697_p11 = scmp.lt.s32.totalorder %s695_s7, %s688_s30 }
  0x44   : > { %p692_p8 = pneg %p691_p3  ;;  %p698_p13 = por %p697_p11, %p696_p5 }
  0x46   : > { %p699_p2 = pnand %p698_p13, %p692_p8 }
  0x48   : > { %702 = shalt.err (!%p699_p2)
}
  0x49   : > { %s779_s8 = smov 512   ;;  %s780_s28 = smov 128  }
  0x4a   : > { %s781_s10 = smov 8   ;;  %p1044_p6 = scmp.ne.s32.totalorder %s1039_s26, 0 }
  0x4b   : > { %572 = dma.hbm_to_vmem [thread:$0]  (!%p901_p4), %s909_s9, 1792, %s911_s22, %s913_s29, %s779_s8, %s780_s28, %s781_s10  }
  0x4c   : > { %174 = sbr.rel (%p1044_p6) target bundleno = 485 (0x1e5), region = 28  ;;  %s944_s11 = sand.u32 (!%p1044_p6), 1, %s765_s13  }
  0x4d   : > { %s556_s17 = smul.u32 (!%p1044_p6), 112, %s944_s11  ;;  %s177_s19 = scalar_lea.sflag (!%p1044_p6), [#allocation3], %s944_s11 }
  0x4e   : > { %p1045_p12 = scmp.ne.s32.totalorder (!%p1044_p6), %s1036_s23, 0 }
  0x4f   : > { %s948_s20 = scalar_lea.vmem (!%p1044_p6), [#allocation2], %s556_s17 }
  0x53   : > { %748 = dma.done.wait (%p1045_p12), %s177_s19, 1792  }
  0x54   : > { %750 = vsyncadd (%p1045_p12), %s177_s19, 4294965504  ;;  %p1046_p4 = scmp.eq.s32.totalorder %s828_s16, 0 }
  0x56   : > { %752 = dma.done.wait (%p1046_p4), [#allocation6], 128   ;;  %p1047_p0 = pmov %p1046_p4 }
  0x57   : > { %v782_v0 = vmov 0   ;;  %v623_v1 = vld [vmem:[%s948_s20 + $0x4] ss:$8 sps:$4 sm:$0xff]   ;;  %v625_v2 = vld [vmem:[%s948_s20] ss:$8 sps:$4 sm:$0xff]   ;;  %vm311_vm0 = vcmask 1045504  }
  0x58   : > { %754 = vsyncadd (%p1047_p0), [#allocation6], 4294967168  ;;  %350 = vmatprep.mubr.bf16.mxu0 %v782_v0  ;;  %318 = vmatprep.subr.bf16.mxu0 %v623_v1  ;;  %v626_v3 = vld [vmem:[%s948_s20 + $0x14] ss:$8 sps:$4 sm:$0xff]   ;;  %v628_v4 = vld [vmem:[%s948_s20 + $0x10] ss:$8 sps:$4 sm:$0xff]  }
  0x59   : > { %319 = vmatpush1.bf16.msra.mxu0 %v625_v2  ;;  %v629_v5 = vld [vmem:[%s948_s20 + $0x24] ss:$8 sps:$4 sm:$0xff]   ;;  %v631_v6 = vld [vmem:[%s948_s20 + $0x20] ss:$8 sps:$4 sm:$0xff]   ;;  %v632_v7 = vld [vmem:[%s948_s20 + $0x34] ss:$8 sps:$4 sm:$0xff]  }
  0x5a   : > { %320 = vmatprep.subr.bf16.mxu0 %v626_v3  ;;  %v634_v8 = vld [vmem:[%s948_s20 + $0x30] ss:$8 sps:$4 sm:$0xff]   ;;  %v635_v9 = vld [vmem:[%s948_s20 + $0x44] ss:$8 sps:$4 sm:$0xff]   ;;  %v637_v10 = vld [vmem:[%s948_s20 + $0x40] ss:$8 sps:$4 sm:$0xff]  }
  0x5b   : > { %v638_v11 = vld [vmem:[%s948_s20 + $0x54] ss:$8 sps:$4 sm:$0xff]   ;;  %v640_v12 = vld [vmem:[%s948_s20 + $0x50] ss:$8 sps:$4 sm:$0xff]   ;;  %vm307_vm1 = vcmask 883712   ;;  %s525_s23 = sshll.u32 %s944_s11, 4 }
  0x5c   : > { %v641_v13 = vld [vmem:[%s948_s20 + $0x64] ss:$8 sps:$4 sm:$0x3f]   ;;  %v643_v14 = vld [vmem:[%s948_s20 + $0x60] ss:$8 sps:$4 sm:$0x3f]  }
  0x5d   : > { %321 = vmatpush1.bf16.msra.mxu0 %v628_v4  ;;  %v313_v15 = vsel %vm311_vm0, %v643_v14, 0  ;;  %v644_v16 = vld [vmem:[#allocation5] sm:$0xff]   ;;  %s204_s26 = scalar_lea.vmem [#allocation7], %s525_s23  ;;  %s554_s9 = sshll.u32 %s828_s16, 7 }
  0x5e   : > { %322 = vmatprep.subr.bf16.mxu0 %v629_v5  ;;  %s407_s4 = sshll.u32 %s204_s26, 4  ;;  %s979_s27 = scalar_lea.hbm %s1029_s2, %s554_s9  ;;  %s974_s4 = int_to_ptr.vmem [resolvable:$true] %s407_s4 }
  0x5f   : > { %s390_s30 = scalar_lea.sflag [#allocation4], %s944_s11  ;;  %s703_s5 = scalar_lea.vmem %s974_s4, 256 }
  0x60   : > { %p704_p7 = scmp.ne.s32.totalorder %s974_s4, %s703_s5  ;;  %p1048_p9 = scmp.ne.s32.totalorder %s1037_s24, 0 }
  0x61   : > { %323 = vmatpush1.bf16.msra.mxu0 %v631_v6  ;;  %s783_s6 = smov [#allocation7]  }
  0x62   : > { %324 = vmatprep.subr.bf16.mxu0 %v632_v7  ;;  %p705_p10 = pnand %p704_p7, %p1048_p9  ;;  %s707_s7 = sshll.u32 %s783_s6, 4  ;;  %s708_s7 = int_to_ptr.vmem [resolvable:$false] %s707_s7 }
  0x63   : > { %s709_s8 = scalar_lea.vmem %s708_s7, 512  ;;  %p710_p3 = scmp.lt.s32.totalorder %s974_s4, %s708_s7 }
  0x64   : > { %p706_p1 = pneg %p705_p10  ;;  %p711_p8 = scmp.lt.s32.totalorder %s709_s8, %s703_s5 }
  0x65   : > { %325 = vmatpush1.bf16.msra.mxu0 %v634_v8 }
  0x66   : > { %326 = vmatprep.subr.bf16.mxu0 %v635_v9  ;;  %p712_p5 = por %p711_p8, %p710_p3 }
  0x68   : > { %p713_p11 = pnand %p712_p5, %p706_p1 }
  0x69   : > { %327 = vmatpush1.bf16.msra.mxu0 %v637_v10 }
  0x6a   : > { %328 = vmatprep.subr.bf16.mxu0 %v638_v11 }
  0x6d   : > { %329 = vmatpush1.bf16.msra.mxu0 %v640_v12 }
  0x6e   : > { %542 = vmatprep.subr.msk.bf16.mxu0 %vm311_vm0, %v641_v13 }
  0x71   : > { %331 = vmatpush1.bf16.msra.mxu0 %v313_v15 }
  0x74   : > { %543 = vmatmul.mubr.msk.bf16.vlgmr.msra.gmra.mrb[0].mxu0 %vm307_vm1, %v644_v16 }
 0x147   : > { %v352_v17 = vpop.f32.mrb[0].mxu0 }
 0x148   : > { %v354_v18 = vpop.f32.mrb[1].mxu0 }
 0x149   : > { %v552_v19 = vpack.c.bf16 %v354_v18, %v352_v17  ;;  %v356_v20 = vpop.f32.mrb[2].mxu0 }
 0x14a   : > { %v361_v21 = vpack.c.bf16 %v356_v20, %v352_v17  ;;  %v358_v22 = vpop.f32.mrb[3].mxu0 }
 0x14b   : > { %373 = vst [vmem:[%s204_s26] sm:$0xff] %v552_v19  ;;  %v362_v23 = vpack.c.bf16 %v358_v22, %v354_v18  ;;  %v553_v24 = vpack.c.bf16 %v358_v22, %v356_v20 }
 0x14c   : > { %v375_v25 = vunpack.c.l.bf16 %v361_v21 }
 0x14d   : > { %374 = vst [vmem:[%s204_s26 + $0x8] sm:$0xff] %v553_v24  ;;  %v376_v26 = vunpack.c.l.bf16 %v362_v23 }
 0x14e   : > { %v380_v27 = vmul.f32 %v375_v25, %v375_v25 }
 0x14f   : > { %v381_v28 = vmul.f32 %v376_v26, %v376_v26  ;;  %v377_v29 = vadd.f32 %v376_v26, %v375_v25 }
 0x151   : > { %378 = vadd.xlane.f32.xlu0 %v377_v29  ;;  %v382_v30 = vadd.f32 %v381_v28, %v380_v27 }
 0x155   : > { %383 = vadd.xlane.f32.xlu0 %v382_v30 }
 0x156   : > { %716 = shalt.err (!%p713_p11)
}
 0x157   : > { %s717_s28 = scalar_lea.hbm %s979_s27, 256  ;;  %s721_s19 = scalar_lea.hbm %s1029_s2, 1024 }
 0x158   : > { %p718_p13 = scmp.ne.s32.totalorder %s979_s27, %s717_s28  ;;  %p722_p12 = scmp.lt.u32.totalorder %s979_s27, %s1029_s2 }
 0x159   : > { %p723_p4 = scmp.lt.u32.totalorder %s721_s19, %s717_s28  ;;  %p725_p7 = scmp.lt.u32.totalorder %s717_s28, %s979_s27 }
 0x15a   : > { %p719_p2 = pnand %p718_p13, %p1048_p9 }
 0x15b   : > { %p724_p0 = por %p723_p4, %p722_p12 }
 0x15c   : > { %p720_p6 = pneg %p719_p2 }
 0x15d   : > { %p726_p10 = por %p725_p7, %p724_p0 }
 0x15f   : > { %p727_p1 = pnand %p726_p10, %p720_p6 }
 0x161   : > { %730 = shalt.err (!%p727_p1)
}
 0x162   : > { %s784_s26 = smov 128   ;;  %s785_s9 = smov 512   ;;  %vm385_vm2 = vcmask 7168   ;;  %vm387_vm3 = vcmask 15360  }
 0x163   : > { %s786_s22 = smov 8   ;;  %p213_p3 = scmp.lt.s32.totalorder %s828_s16, 3 }
 0x164   : > { %563 = dma.vmem_to_hbm [thread:$0]  (%p1048_p9), %s974_s4, 256, %s979_s27, %s390_s30, %s784_s26, %s785_s9, %s786_s22  }
 0x165   : > { %s1055_s16 = smov (!%p213_p3, %s828_s16), 3 }
 0x166   : > { %s526_s29 = sshll.u32 %s1055_s16, 3 }
 0x167   : > { %s216_s7 = scalar_lea.vmem %s1030_s3, %s526_s29 }
 0x1de   : > { %v379_v31 = vpop.xlane.xlu0 %378 }
 0x1e2   : > { %v384_v32 = vpop.xlane.xlu0 %383 }
 0x1e3   : > { %v386_v33 = vsel %vm385_vm2, %v379_v31, %v384_v32 }
 0x1e4   : > { %388 = vst.msk [vmem:[%s216_s7] sm:$0xff] %vm387_vm3, %v386_v33 }
 0x1e5 PF: > { %p580_p8 = scmp.ge.s32.totalorder %s773_s15, 2  ;;  %s425_s24 = sand.u32 1, %s761_s12  }
 0x1e6   : > { %p1049_p9 = scmp.ne.s32.totalorder %s1038_s25, 0  ;;  %s426_s11 = scalar_lea.sflag [#allocation4], %s425_s24 }
 0x1e8   : > { %p574_p5 = pnand %p580_p8, %p1049_p9 }
 0x1ea   : > { %756 = dma.done.wait (!%p574_p5), %s426_s11, 256  }
 0x1eb   : > { %758 = vsyncadd (!%p574_p5), %s426_s11, 4294967040  ;;  %p18_p11 = scmp.ge.s32.totalorder %s832_s18, 6   ;;  %s1050_s12 = smov %s765_s13 }
 0x1ec   : > { %s1051_s13 = smov %s769_s14  ;;  %s1052_s14 = smov %s844_s21 }
 0x1ed   : > { %s1053_s15 = smov %s832_s18  ;;  %20 = sbr.rel (!%p18_p11) target bundleno = 6 (0x6), region = 89 }
 0x1f4   :  { %438 = vsyncpa [#allocation3], 1 }
 0x1f5   :  { %440 = vsyncpa [#allocation3 + $0x1], 1 }
 0x1f6   :  { %441 = vsyncpa [#allocation6], 1 }
 0x1f7   :  { %442 = vsyncpa [#allocation4], 1 }
 0x1f8   :  { %444 = vsyncpa [#allocation4 + $0x1], 1 }

</bundles_post_ra>
